<compile_context>
chip_gen: v5e
topology: v5e:2x2
jax: 0.10.0
libtpu: 0.0.40
codegen_flags: <defaults>
</compile_context>

<pallas_src>
import functools

import jax
import jax.numpy as jnp
import numpy as np
from jax import lax
from jax.experimental import pallas as pl
from jax.experimental.pallas import tpu as pltpu


def _pick_tile(dim, target):
    """Largest power-of-two divisor of `dim` that is <= target, else the full dim."""
    if dim <= target:
        return dim
    t = target
    while t >= 8:
        if dim % t == 0:
            return t
        t //= 2
    # TODO(synk): pad ragged dims (e.g. V=50257) instead of falling back to one block.
    return dim


# ----------------------------------------------------------------------------
# Pallas kernel 1: tiled matmul with fused bias (+ optional GELU) epilogue.
#   x:(M,K) bf16  @  w:(K,N) bf16  -> o:(M,N) out_dtype, f32 accumulation.
# ----------------------------------------------------------------------------
def _matmul_bias_kernel(x_ref, w_ref, b_ref, o_ref, acc_ref, *, activation):
    @pl.when(pl.program_id(2) == 0)
    def _():
        acc_ref[...] = jnp.zeros_like(acc_ref)

    acc_ref[...] += jnp.dot(x_ref[...], w_ref[...],
                            preferred_element_type=jnp.float32)

    @pl.when(pl.program_id(2) == pl.num_programs(2) - 1)
    def _():
        out = acc_ref[...] + b_ref[...].astype(jnp.float32)
        if activation == "gelu":
            out = jax.nn.gelu(out, approximate=True)
        o_ref[...] = out.astype(o_ref.dtype)


def pallas_matmul_bias(x, w, b, activation=None, out_dtype=jnp.float32,
                       tm_target=256, tn_target=256, tk_target=512):
    M, K = x.shape
    K2, N = w.shape
    assert K == K2
    tm = _pick_tile(M, tm_target)
    tn = _pick_tile(N, tn_target)   # multiples of 256 match v6e/v7x MXU; 128 on v5e
    tk = _pick_tile(K, tk_target)
    x = x.astype(jnp.bfloat16)
    w = w.astype(jnp.bfloat16)
    b2 = b.reshape(1, N).astype(jnp.float32)
    kern = functools.partial(_matmul_bias_kernel, activation=activation)
    return pl.pallas_call(
        kern,
        out_shape=jax.ShapeDtypeStruct((M, N), out_dtype),
        grid=(M // tm, N // tn, K // tk),
        in_specs=[pl.BlockSpec((tm, tk), lambda i, j, k: (i, k)),
                  pl.BlockSpec((tk, tn), lambda i, j, k: (k, j)),
                  pl.BlockSpec((1, tn), lambda i, j, k: (0, j))],
        out_specs=pl.BlockSpec((tm, tn), lambda i, j, k: (i, j)),
        scratch_shapes=[pltpu.VMEM((tm, tn), jnp.float32)],
        compiler_params=pltpu.CompilerParams(
            dimension_semantics=("parallel", "parallel", "arbitrary")),
    )(x, w, b2)


# ----------------------------------------------------------------------------
# Pallas kernel 2: fused LM-head + token cross entropy (ignore_index=-100).
#   Grid (row blocks "parallel", vocab blocks "arbitrary"); online log-sum-exp
#   over vocab tiles; logits never hit HBM. Emits per-token loss & validity,
#   reduced to a mean in XLA.
# ----------------------------------------------------------------------------
def _lmhead_ce_kernel(h_ref, w_ref, lab_ref, loss_ref, valid_ref,
                      m_sc, s_sc, g_sc):
    j = pl.program_id(1)

    @pl.when(j == 0)
    def _():
        m_sc[...] = jnp.full_like(m_sc, -jnp.inf)
        s_sc[...] = jnp.zeros_like(s_sc)
        g_sc[...] = jnp.zeros_like(g_sc)

    h = h_ref[...]                                           # (tm, D) bf16
    w = w_ref[...]                                           # (tv, D) bf16
    labels = lab_ref[...]                                    # (tm, 1) i32
    logits = lax.dot_general(h, w, (((1,), (1,)), ((), ())),
                             preferred_element_type=jnp.float32)  # (tm, tv)

    tv = logits.shape[1]
    cls_ids = j * tv + lax.broadcasted_iota(jnp.int32, logits.shape, 1)
    g_sc[...] += jnp.sum(jnp.where(cls_ids == labels, logits, 0.0),
                         axis=-1, keepdims=True)

    m_prev = m_sc[...]
    m_new = jnp.maximum(m_prev, jnp.max(logits, axis=-1, keepdims=True))
    s_sc[...] = (s_sc[...] * jnp.exp(m_prev - m_new)
                 + jnp.sum(jnp.exp(logits - m_new), axis=-1, keepdims=True))
    m_sc[...] = m_new

    @pl.when(j == pl.num_programs(1) - 1)
    def _():
        valid = labels != -100
        lse = m_sc[...] + jnp.log(s_sc[...])
        loss_ref[...] = jnp.where(valid, lse - g_sc[...], 0.0)
        valid_ref[...] = valid.astype(jnp.float32)


def fused_lmhead_cross_entropy(h2d, wte, labels1d, *, tm_target=256, tv_target=512):
    N, D = h2d.shape
    V = wte.shape[0]
    tm = _pick_tile(N, tm_target)
    tv = _pick_tile(V, tv_target)
    labels2d = labels1d.reshape(N, 1).astype(jnp.int32)
    loss, valid = pl.pallas_call(
        _lmhead_ce_kernel,
        out_shape=(jax.ShapeDtypeStruct((N, 1), jnp.float32),
                   jax.ShapeDtypeStruct((N, 1), jnp.float32)),
        grid=(N // tm, V // tv),
        in_specs=[pl.BlockSpec((tm, D), lambda i, j: (i, 0)),
                  pl.BlockSpec((tv, D), lambda i, j: (j, 0)),
                  pl.BlockSpec((tm, 1), lambda i, j: (i, 0))],
        out_specs=(pl.BlockSpec((tm, 1), lambda i, j: (i, 0)),
                   pl.BlockSpec((tm, 1), lambda i, j: (i, 0))),
        scratch_shapes=[pltpu.VMEM((tm, 1), jnp.float32)] * 3,
        compiler_params=pltpu.CompilerParams(
            dimension_semantics=("parallel", "arbitrary")),
    )(h2d.astype(jnp.bfloat16), wte.astype(jnp.bfloat16), labels2d)
    total = jnp.sum(loss)
    count = jnp.maximum(jnp.sum(valid), 1.0)   # guard: all labels == -100
    return total / count


# ----------------------------------------------------------------------------
# Pallas kernel 3: cosine-similarity + SimCTG margin contrastive loss,
#   tiled over (batch, q-row blocks), both axes "parallel".
# ----------------------------------------------------------------------------
def _cl_kernel(hq_ref, hk_ref, idsq_ref, idsk_ref, num_ref, den_ref,
               *, margin, pad_token_id):
    hq = hq_ref[0]                                            # (tq, D) f32
    hk = hk_ref[0]                                            # (S,  D) f32
    tq, S = hq.shape[0], hk.shape[0]

    inv_q = lax.rsqrt(jnp.sum(hq * hq, axis=-1, keepdims=True) + 1e-12)
    inv_k = lax.rsqrt(jnp.sum(hk * hk, axis=-1, keepdims=True) + 1e-12)
    nq = hq * inv_q
    nk = hk * inv_k
    # cosine scores for this q slab against all keys (contract on D, no transpose)
    scores = lax.dot_general(nq, nk, (((1,), (1,)), ((), ())),
                             preferred_element_type=jnp.float32)   # (tq, S)

    q_base = pl.program_id(1) * tq
    row_i = q_base + lax.broadcasted_iota(jnp.int32, (tq, S), 0)
    col_i = lax.broadcasted_iota(jnp.int32, (tq, S), 1)

    gold = jnp.sum(jnp.where(row_i == col_i, scores, 0.0),
                   axis=-1, keepdims=True)                    # (tq, 1)
    loss_mat = jnp.maximum(margin - (gold - scores), 0.0)     # (tq, S)

    ids_k = idsk_ref[...]                                     # (1, 1, S)
    ids_q = idsq_ref[...]                                     # (1, tq, 1)
    vl = jnp.sum((ids_k != pad_token_id).astype(jnp.int32))   # valid length (scalar)
    mask_q = (ids_q[0] != pad_token_id).astype(jnp.float32)   # (tq, 1)

    in_range = (row_i < vl) & (col_i < vl) & (row_i != col_i)  # single bool mask
    masked = jnp.where(in_range, loss_mat, 0.0)

    num_ref[0] = jnp.sum(masked, axis=-1, keepdims=True) * mask_q
    den_ref[0] = jnp.sum(in_range.astype(jnp.float32), axis=-1, keepdims=True)


def contrastive_loss_pallas(margin, last_hidden, input_ids, pad_token_id,
                            tq_target=256):
    B, S, D = last_hidden.shape
    tq = _pick_tile(S, tq_target)
    h = last_hidden.astype(jnp.float32)       # cosine path kept in f32 (precision)
    ids_q = input_ids.astype(jnp.int32)[:, :, None]   # (B, S, 1)
    ids_k = input_ids.astype(jnp.int32)[:, None, :]   # (B, 1, S)
    kern = functools.partial(_cl_kernel, margin=float(margin),
                             pad_token_id=int(pad_token_id))
    num, den = pl.pallas_call(
        kern,
        out_shape=(jax.ShapeDtypeStruct((B, S, 1), jnp.float32),
                   jax.ShapeDtypeStruct((B, S, 1), jnp.float32)),
        grid=(B, S // tq),
        in_specs=[pl.BlockSpec((1, tq, D), lambda b, q: (b, q, 0)),
                  pl.BlockSpec((1, S, D), lambda b, q: (b, 0, 0)),
                  pl.BlockSpec((1, tq, 1), lambda b, q: (b, q, 0)),
                  pl.BlockSpec((1, 1, S), lambda b, q: (b, 0, 0))],
        out_specs=(pl.BlockSpec((1, tq, 1), lambda b, q: (b, q, 0)),
                   pl.BlockSpec((1, tq, 1), lambda b, q: (b, q, 0))),
        compiler_params=pltpu.CompilerParams(
            dimension_semantics=("parallel", "parallel")),
    )(h, h, ids_q, ids_k)
    return jnp.sum(num) / jnp.maximum(jnp.sum(den), 1.0)


# ----------------------------------------------------------------------------
# Tiny deterministic GPT-2-style backbone (glue in plain JAX, matmuls in Pallas)
# ----------------------------------------------------------------------------
def layer_norm(x, g, b, eps=1e-5):
    x = x.astype(jnp.float32)
    mu = jnp.mean(x, axis=-1, keepdims=True)
    var = jnp.mean((x - mu) ** 2, axis=-1, keepdims=True)
    return (x - mu) * lax.rsqrt(var + eps) * g + b


def init_params(key, V, D, L, H, max_pos):
    keys = jax.random.split(key, 2 + L)
    bf = jnp.bfloat16
    p = {
        'wte': (0.02 * jax.random.normal(keys[0], (V, D), jnp.float32)).astype(bf),
        'wpe': 0.01 * jax.random.normal(keys[1], (max_pos, D), jnp.float32),
        'lnf_g': jnp.ones((D,), jnp.float32),
        'lnf_b': jnp.zeros((D,), jnp.float32),
        'n_heads': H,
        'layers': [],
    }
    for l in range(L):
        kk = jax.random.split(keys[2 + l], 4)
        p['layers'].append(dict(
            ln1_g=jnp.ones((D,), jnp.float32), ln1_b=jnp.zeros((D,), jnp.float32),
            attn_w=(0.02 * jax.random.normal(kk[0], (D, 3 * D), jnp.float32)).astype(bf),
            attn_b=jnp.zeros((3 * D,), jnp.float32),
            attn_proj_w=(0.02 * jax.random.normal(kk[1], (D, D), jnp.float32)).astype(bf),
            attn_proj_b=jnp.zeros((D,), jnp.float32),
            ln2_g=jnp.ones((D,), jnp.float32), ln2_b=jnp.zeros((D,), jnp.float32),
            fc_w=(0.02 * jax.random.normal(kk[2], (D, 4 * D), jnp.float32)).astype(bf),
            fc_b=jnp.zeros((4 * D,), jnp.float32),
            fc_proj_w=(0.02 * jax.random.normal(kk[3], (4 * D, D), jnp.float32)).astype(bf),
            fc_proj_b=jnp.zeros((D,), jnp.float32),
        ))
    return p


def gpt2_tiny_forward(params, input_ids):
    B, S = input_ids.shape
    D = params['wte'].shape[1]
    H = params['n_heads']
    Dh = D // H
    h = params['wte'][input_ids].astype(jnp.float32) + params['wpe'][:S][None, :, :]
    causal = jnp.tril(jnp.ones((S, S), dtype=bool))
    for lyr in params['layers']:
        x = layer_norm(h, lyr['ln1_g'], lyr['ln1_b'])
        qkv = pallas_matmul_bias(x.reshape(B * S, D), lyr['attn_w'], lyr['attn_b'],
                                 out_dtype=jnp.bfloat16)
        qkv = qkv.astype(jnp.float32).reshape(B, S, 3, H, Dh)
        q, k, v = qkv[:, :, 0], qkv[:, :, 1], qkv[:, :, 2]
        att = jnp.einsum('bqhd,bkhd->bhqk', q, k) / jnp.sqrt(jnp.float32(Dh))
        att = jnp.where(causal[None, None], att, -1e9)
        att = jax.nn.softmax(att, axis=-1)
        o = jnp.einsum('bhqk,bkhd->bqhd', att, v).reshape(B * S, D)
        o = pallas_matmul_bias(o, lyr['attn_proj_w'], lyr['attn_proj_b'],
                               out_dtype=jnp.float32)
        h = h + o.reshape(B, S, D)
        x = layer_norm(h, lyr['ln2_g'], lyr['ln2_b'])
        m = pallas_matmul_bias(x.reshape(B * S, D), lyr['fc_w'], lyr['fc_b'],
                               activation='gelu', out_dtype=jnp.bfloat16)
        m = pallas_matmul_bias(m, lyr['fc_proj_w'], lyr['fc_proj_b'],
                               out_dtype=jnp.float32)
        h = h + m.reshape(B, S, D)
    h = layer_norm(h, params['lnf_g'], params['lnf_b'])
    return h            # logits are produced inside the fused LM-head/CE kernel


def simctg_forward(params, input_ids, labels, margin, pad_token_id):
    last_hidden = gpt2_tiny_forward(params, input_ids)
    B, S, D = last_hidden.shape
    mle_loss = fused_lmhead_cross_entropy(last_hidden.reshape(B * S, D),
                                          params['wte'], labels.reshape(-1))
    cl_loss = contrastive_loss_pallas(margin, last_hidden, input_ids, pad_token_id)
    return mle_loss, cl_loss


# ----------------------------------------------------------------------------
# Pure-JAX reference for the SimCTG losses (same hidden states, no Pallas)
# ----------------------------------------------------------------------------
def reference_losses(last_hidden, logits, input_ids, labels, margin, pad_id):
    B, S, V = logits.shape
    lg = logits.reshape(-1, V).astype(jnp.float32)
    lb = labels.reshape(-1)
    lse = jax.scipy.special.logsumexp(lg, axis=-1)
    valid = lb != -100
    safe_lb = jnp.where(valid, lb, 0)
    gathered = jnp.take_along_axis(lg, safe_lb[:, None], axis=-1)[:, 0]
    loss = jnp.where(valid, lse - gathered, 0.0)
    mle = loss.sum() / valid.sum()

    nr = last_hidden / jnp.linalg.norm(last_hidden, axis=-1, keepdims=True)
    sc = jnp.einsum('bqd,bkd->bqk', nr, nr)
    gold = jnp.diagonal(sc, axis1=1, axis2=2)[..., None]
    lm = jax.nn.relu(margin - (gold - sc))
    im = (input_ids != pad_id).astype(jnp.float32)
    vl = im.sum(-1)
    idx = jnp.arange(S)
    mask = ((idx[:, None] != idx[None, :])[None]
            & (idx[None, :, None] < vl[:, None, None])
            & (idx[None, None, :] < vl[:, None, None])).astype(jnp.float32)
    rs = (lm * mask).sum(-1) * im
    cl = rs.sum() / mask.sum()
    return mle, cl


if __name__ == "__main__":
    B, S, D, V, H, L = 2, 8, 32, 128, 4, 2
    pad_token_id = 0
    margin = 0.5

    key = jax.random.PRNGKey(0)
    k_ids, k_par = jax.random.split(key)

    input_ids = jax.random.randint(k_ids, (B, S), 1, V, dtype=jnp.int32)
    input_ids = input_ids.at[1, 6:].set(pad_token_id)        # pad tail of seq 1
    labels = input_ids.at[1, 6:].set(-100)                   # ignore padded labels

    params = init_params(k_par, V, D, L, H, max_pos=64)

    mle_loss, cl_loss = simctg_forward(params, input_ids, labels,
                                       margin, pad_token_id)
    jax.block_until_ready((mle_loss, cl_loss))

    # sanity check against a pure-JAX reference of the SimCTG losses
    hid = gpt2_tiny_forward(params, input_ids)
    logits_ref = jnp.einsum('bsd,vd->bsv', hid,
                            params['wte'].astype(jnp.float32))
    mle_ref, cl_ref = reference_losses(hid, logits_ref, input_ids, labels,
                                       margin, pad_token_id)
    np.testing.assert_allclose(np.array(mle_loss), np.array(mle_ref),
                               rtol=1e-2, atol=1e-2)
    np.testing.assert_allclose(np.array(cl_loss), np.array(cl_ref),
                               rtol=1e-2, atol=1e-2)

    print("KERNEL_OK")
</pallas_src>

<mosaic_0001>
module attributes {stable_mosaic.version = 11 : i64} {
  func.func @_matmul_bias_kernel(%arg0: i32, %arg1: i32, %arg2: i32, %arg3: memref<16x32xbf16, #tpu.memory_space<vmem>>, %arg4: memref<32x96xbf16, #tpu.memory_space<vmem>>, %arg5: memref<1x96xf32, #tpu.memory_space<vmem>>, %arg6: memref<16x96xbf16, #tpu.memory_space<vmem>>, %arg7: memref<16x96xf32, #tpu.memory_space<vmem>>) attributes {dimension_semantics = [#tpu.dimension_semantics<parallel>, #tpu.dimension_semantics<parallel>, #tpu.dimension_semantics<arbitrary>], iteration_bounds = array<i64: 1, 1, 1>, scalar_prefetch = 0 : i64, scratch_operands = 1 : i64, tpu.core_type = #tpu.core_type<tc>, window_params = [{transform_indices = @transform_0, window_bounds = array<i64: 16, 32>}, {transform_indices = @transform_1, window_bounds = array<i64: 32, 96>}, {transform_indices = @transform_2, window_bounds = array<i64: 1, 96>}, {transform_indices = @transform_3, window_bounds = array<i64: 16, 96>}]} {
    %c0_i32 = arith.constant 0 : i32
    %0 = arith.cmpi eq, %arg2, %c0_i32 : i32
    %1 = arith.extui %0 : i1 to i32
    %c0_i32_0 = arith.constant 0 : i32
    %2 = arith.cmpi ne, %1, %c0_i32_0 : i32
    scf.if %2 {
      %cst_10 = arith.constant 0.000000e+00 : f32
      %12 = vector.broadcast %cst_10 : f32 to vector<16x96xf32>
      %c0_11 = arith.constant 0 : index
      %c0_12 = arith.constant 0 : index
      %13 = vector.load %arg7[%c0_11, %c0_12] : memref<16x96xf32, #tpu.memory_space<vmem>>, vector<16x96xf32>
      tpu.vector_store %arg7[%c0_11, %c0_12], %12 {strides = array<i32>} : memref<16x96xf32, #tpu.memory_space<vmem>>, vector<16x96xf32>,
    } else {
    }
    %c0 = arith.constant 0 : index
    %c0_1 = arith.constant 0 : index
    %3 = vector.load %arg7[%c0, %c0_1] : memref<16x96xf32, #tpu.memory_space<vmem>>, vector<16x96xf32>
    %c0_2 = arith.constant 0 : index
    %c0_3 = arith.constant 0 : index
    %4 = vector.load %arg3[%c0_2, %c0_3] : memref<16x32xbf16, #tpu.memory_space<vmem>>, vector<16x32xbf16>
    %c0_4 = arith.constant 0 : index
    %c0_5 = arith.constant 0 : index
    %5 = vector.load %arg4[%c0_4, %c0_5] : memref<32x96xbf16, #tpu.memory_space<vmem>>, vector<32x96xbf16>
    %cst = arith.constant dense<0.000000e+00> : vector<16x96xf32>
    %6 = tpu.matmul %4, %5, %cst {dimension_numbers = #tpu.dot_dimension_numbers<[1], [0], [0], [1], [0, 0, 1, 1], [], []>} : vector<16x32xbf16>, vector<32x96xbf16>, vector<16x96xf32> -> vector<16x96xf32>
    %7 = arith.addf %3, %6 : vector<16x96xf32>
    %c0_6 = arith.constant 0 : index
    %c0_7 = arith.constant 0 : index
    %8 = vector.load %arg7[%c0_6, %c0_7] : memref<16x96xf32, #tpu.memory_space<vmem>>, vector<16x96xf32>
    tpu.vector_store %arg7[%c0_6, %c0_7], %7 {strides = array<i32>} : memref<16x96xf32, #tpu.memory_space<vmem>>, vector<16x96xf32>,
    %c0_i32_8 = arith.constant 0 : i32
    %9 = arith.cmpi eq, %arg2, %c0_i32_8 : i32
    %10 = arith.extui %9 : i1 to i32
    %c0_i32_9 = arith.constant 0 : i32
    %11 = arith.cmpi ne, %10, %c0_i32_9 : i32
    scf.if %11 {
      %c0_10 = arith.constant 0 : index
      %c0_11 = arith.constant 0 : index
      %12 = vector.load %arg7[%c0_10, %c0_11] : memref<16x96xf32, #tpu.memory_space<vmem>>, vector<16x96xf32>
      %c0_12 = arith.constant 0 : index
      %c0_13 = arith.constant 0 : index
      %13 = vector.load %arg5[%c0_12, %c0_13] : memref<1x96xf32, #tpu.memory_space<vmem>>, vector<1x96xf32>
      %14 = vector.broadcast %13 : vector<1x96xf32> to vector<16x96xf32>
      %15 = arith.addf %12, %14 : vector<16x96xf32>
      %16 = arith.truncf %15 : vector<16x96xf32> to vector<16x96xbf16>
      %c0_14 = arith.constant 0 : index
      %c0_15 = arith.constant 0 : index
      %17 = vector.load %arg6[%c0_14, %c0_15] : memref<16x96xbf16, #tpu.memory_space<vmem>>, vector<16x96xbf16>
      tpu.vector_store %arg6[%c0_14, %c0_15], %16 {strides = array<i32>} : memref<16x96xbf16, #tpu.memory_space<vmem>>, vector<16x96xbf16>,
    } else {
    }
    return
  }
  func.func @transform_0(%arg0: i32, %arg1: i32, %arg2: i32) -> (i32, i32) {
    %c0_i32 = arith.constant 0 : i32
    return %arg0, %arg2 : i32, i32
  }
  func.func @transform_1(%arg0: i32, %arg1: i32, %arg2: i32) -> (i32, i32) {
    %c0_i32 = arith.constant 0 : i32
    return %arg2, %arg1 : i32, i32
  }
  func.func @transform_2(%arg0: i32, %arg1: i32, %arg2: i32) -> (i32, i32) {
    %c0_i32 = arith.constant 0 : i32
    %c0_i32_0 = arith.constant 0 : i32
    return %c0_i32, %arg1 : i32, i32
  }
  func.func @transform_3(%arg0: i32, %arg1: i32, %arg2: i32) -> (i32, i32) {
    %c0_i32 = arith.constant 0 : i32
    return %arg0, %arg1 : i32, i32
  }
}

</mosaic_0001>

<bundles_post_ra>
// kernel: tpu_custom_call.1
= control target key start
LH: loop header
LB: loop body
LE: loop exit
PB: predicated region body
PF: predicated region fallthrough
CT: control target
= control target key end

     0   :  { %8 = vsyncpa [#allocation4], 0  ;;  %s291_s0 = inlined_call_operand.hbm [shape: bf16[16,32], index: 0, kind: input, shape index: {}]   ;;  %s292_s1 = inlined_call_operand.hbm [shape: bf16[32,96], index: 1, kind: input, shape index: {}]   ;;  %s293_s2 = inlined_call_operand.vmem [shape: f32[1,96], index: 2, kind: input, shape index: {}]   ;;  %s294_s3 = inlined_call_operand.hbm [shape: bf16[16,96], index: 3, kind: output, shape index: {}]  }
   0x1   :  { %9 = vsyncpa [#allocation7], 0 }
   0x2   :  { %10 = vsyncpa [#allocation5], 0  ;;  %s15_s14 = sshll.u32 %s291_s0, 4  ;;  %s240_s15 = smov [#allocation3]   ;;  %s16_s14 = int_to_ptr.hbm [resolvable:$true] %s15_s14 }
   0x3   :  { %s17_s16 = sshll.u32 %s240_s15, 4  ;;  %s28_s19 = sshll.u32 %s292_s1, 4  ;;  %s18_s16 = int_to_ptr.vmem [resolvable:$true] %s17_s16  ;;  %s29_s19 = int_to_ptr.hbm [resolvable:$true] %s28_s19 }
   0x4   :  { %s241_s20 = smov 64   ;;  %s242_s21 = smov 4  }
   0x5   :  { %23 = dma.hbm_to_vmem [thread:$0]  %s16_s14, 128, %s18_s16, [#allocation4], %s241_s20, %s241_s20, %s242_s21  }
   0x6   :  { %s243_s22 = smov [#allocation6]  }
   0x7   :  { %s30_s23 = sshll.u32 %s243_s22, 4  ;;  %s31_s23 = int_to_ptr.vmem [resolvable:$true] %s30_s23 }
   0x8   :  { %36 = dma.hbm_to_vmem [thread:$0]  %s29_s19, 256, %s31_s23, [#allocation7], %s241_s20, %s241_s20, %s242_s21  }
   0x9   :  { %234 = dma.done.wait [#allocation4], 128  }
   0xa   :  { %235 = vsyncadd [#allocation4], 4294967168 }
   0xb   :  { %236 = dma.done.wait [#allocation7], 256  }
   0xc   :  { %237 = vsyncadd [#allocation7], 4294967040  ;;  %vm52_vm0 = vcmask 785408   ;;  %v244_v0 = vmov 0.0   ;;  %v154_v1 = vld [vmem:[#allocation6 + $0x8] sm:$0xff]  ;;  %v153_v2 = vld [vmem:[#allocation6] sm:$0xff] }
   0xd   :  { %53 = vst.msk [vmem:[#allocation2] sm:$0xff] %vm52_vm0, %v244_v0  ;;  %90 = vmatpush.bf16.msra.mxu0 %v154_v1  ;;  %v152_v3 = vld [vmem:[#allocation3] sm:$0xff]  ;;  %vm80_vm1 = vcmask 261120   ;;  %v161_v8 = vld [vmem:[%s293_s2] ss:$0 sm:$0xff]  ;;  %vm116_vm2 = vcmask 781312  }
   0xe   :  { %54 = vst.msk [vmem:[#allocation2 + $0x8] sm:$0xff] %vm52_vm0, %v244_v0  ;;  %s245_s24 = smov [#allocation8]   ;;  %s125_s28 = sshll.u32 %s294_s3, 4  ;;  %s126_s28 = int_to_ptr.hbm [resolvable:$true] %s125_s28 }
   0xf   :  { %s123_s25 = sshll.u32 %s245_s24, 4  ;;  %s124_s25 = int_to_ptr.vmem [resolvable:$true] %s123_s25 }
  0x11   :  { %91 = vmatpush.bf16.msra.mxu0 %v153_v2 }
  0x14   :  { %151 = vmatmul.msk.bf16.vlgmr.msra.gmra.mxu0 %vm80_vm1, %v152_v3  ;;  %v55_v4 = vld [vmem:[#allocation2] sm:$0xff] }
  0x15   :  { %v56_v7 = vld [vmem:[#allocation2 + $0x8] sm:$0xff] }
  0x91   :  { %v93_v5 = vpop.f32.mrf.mxu0 }
  0x92   :  { %v98_v6 = vadd.f32 %v93_v5, %v55_v4 }
  0x94   :  { %101 = vst.msk [vmem:[#allocation2] sm:$0xff] %vm52_vm0, %v98_v6 }
  0x99   :  { %v95_v9 = vpop.f32.mrf.mxu0 }
  0x9a   :  { %v99_v10 = vadd.f32 %v95_v9, %v56_v7 }
  0x9b   :  { %v106_v11 = vld [vmem:[#allocation2] sm:$0xff] }
  0x9c   :  { %102 = vst.msk [vmem:[#allocation2 + $0x8] sm:$0xff] %vm52_vm0, %v99_v10  ;;  %v112_v12 = vadd.f32 %v161_v8, %v106_v11 }
  0x9e   :  { %v114_v13 = vpack.c.bf16 %v112_v12, %v112_v12 }
  0xa0   :  { %117 = vst.msk [vmem:[#allocation8] sm:$0xf] %vm116_vm2, %v114_v13 }
  0xa3   :  { %v107_v14 = vld [vmem:[#allocation2 + $0x8] sm:$0xff] }
  0xa4   :  { %v113_v15 = vadd.f32 %v161_v8, %v107_v14 }
  0xa6   :  { %v115_v16 = vpack.c.bf16 %v113_v15, %v113_v15 }
  0xa8   :  { %118 = vst.msk [vmem:[#allocation8 + $0x4] sm:$0xf] %vm116_vm2, %v115_v16 }
  0xa9   :  { %131 = dma.vmem_to_hbm [thread:$0]  %s124_s25, 128, %s126_s28, [#allocation5], %s241_s20, %s241_s20, %s242_s21  }
  0xaa   :  { %238 = dma.done.wait [#allocation5], 128  }
  0xab   :  { %239 = vsyncadd [#allocation5], 4294967168 }
  0xac   :  { %136 = vsyncpa [#allocation4], 1 }
  0xad   :  { %137 = vsyncpa [#allocation7], 1 }
  0xae   :  { %138 = vsyncpa [#allocation5], 1 }

</bundles_post_ra>
